<compile_context>
chip_gen: v7x
topology: tpu7x:2x2x1
jax: 0.10.0
libtpu: 0.0.40
codegen_flags: <defaults>
</compile_context>

<pallas_src>
import jax
import jax.numpy as jnp
import numpy as np
from jax.experimental import pallas as pl
from jax.experimental.pallas import tpu as pltpu


def _transition_kernel(x_ref, scale_ref, shift_ref, w_ref, o_ref):
    # x_ref:     (TH, W//2, 2*CIN)  spatial tile of one image; the lane dim
    #                               packs (w-parity, channel) of the NHWC input
    # scale_ref: (1, 2*CIN)         folded BN scale, tiled over both parities
    # shift_ref: (1, 2*CIN)         folded BN shift, tiled over both parities
    # w_ref:     (2*CIN, COUT)      bf16, 0.25 * [w; w]  (W-pool + /4 folded in)
    # o_ref:     (TH//2, W//2, COUT)
    th, wh, c2 = x_ref.shape
    cout = w_ref.shape[1]

    x = x_ref[...]
    scale = scale_ref[...].reshape(1, 1, c2)
    shift = shift_ref[...].reshape(1, 1, c2)

    # BatchNorm (folded affine) + ReLU -- VPU elementwise.
    h = jnp.maximum(x * scale + shift, 0.0)

    # Average pool along H: pair adjacent rows (leading-dim regroup only).
    h = h.reshape(th // 2, 2, wh, c2)
    hp = h[:, 0] + h[:, 1]                       # (TH//2, W//2, 2*CIN)

    # Average pool along W + 1x1 conv + 1/4 scale fused into one MXU matmul:
    # the duplicated, 0.25-scaled weight sums both W-parities while mixing
    # channels.  bf16 inputs, f32 accumulation.
    lhs = hp.reshape((th // 2) * wh, c2).astype(jnp.bfloat16)
    y = jnp.dot(lhs, w_ref[...], preferred_element_type=jnp.float32)

    o_ref[...] = y.reshape(th // 2, wh, cout).astype(o_ref.dtype)


def _pick_tile_h(H, W, CIN, budget_bytes=4 * 1024 * 1024):
    """Largest even divisor of H whose f32 input tile fits the byte budget."""
    best = 2
    row_bytes = W * CIN * 4
    for th in range(2, H + 1, 2):
        if H % th == 0 and th * row_bytes <= budget_bytes:
            best = th
    return best


def transition_block(x_nchw, gamma, beta, conv_w, eps=1e-5, tile_h=None):
    """x_nchw: (N, Cin, H, W); conv_w: (Cin, Cout); returns (N, Cout, H/2, W/2)."""
    N, CIN, H, W = x_nchw.shape
    COUT = conv_w.shape[1]
    assert H % 2 == 0 and W % 2 == 0

    if tile_h is None:
        tile_h = _pick_tile_h(H, W, CIN)
    assert tile_h % 2 == 0 and H % tile_h == 0

    x_f32 = x_nchw.astype(jnp.float32)

    # --- glue: training-mode BN batch statistics folded into scale/shift ---
    mean = jnp.mean(x_f32, axis=(0, 2, 3))
    var = jnp.mean(jnp.square(x_f32 - mean[None, :, None, None]), axis=(0, 2, 3))
    inv = gamma.astype(jnp.float32) / jnp.sqrt(var + eps)
    scale = jnp.tile(inv, 2).reshape(1, 2 * CIN)
    shift = jnp.tile(beta.astype(jnp.float32) - mean * inv, 2).reshape(1, 2 * CIN)

    # NCHW -> NHWC (channels in lanes), then pack (w-parity, channel) into the
    # lane dim with a free reshape so the kernel needs no strided access.
    # TODO(synk): if the producer emitted NHWC directly this transpose (a full
    # extra HBM round trip of the activations) would disappear.
    x_pk = jnp.transpose(x_f32, (0, 2, 3, 1)).reshape(N, H, W // 2, 2 * CIN)

    # Fold avg-pool's 1/4 and the W-parity sum into a duplicated conv weight;
    # bf16 weights halve their DMA and run the MXU at its bf16 rate.
    w2 = (0.25 * jnp.concatenate(
        [conv_w.astype(jnp.float32), conv_w.astype(jnp.float32)], axis=0
    )).astype(jnp.bfloat16)

    grid = (N, H // tile_h)

    out_nhwc = pl.pallas_call(
        _transition_kernel,
        out_shape=jax.ShapeDtypeStruct((N, H // 2, W // 2, COUT), jnp.float32),
        grid_spec=pltpu.PrefetchScalarGridSpec(
            num_scalar_prefetch=0,
            grid=grid,
            in_specs=[
                pl.BlockSpec((pl.Squeezed(), tile_h, W // 2, 2 * CIN),
                             lambda n, t: (n, t, 0, 0)),
                pl.BlockSpec((1, 2 * CIN), lambda n, t: (0, 0)),
                pl.BlockSpec((1, 2 * CIN), lambda n, t: (0, 0)),
                pl.BlockSpec((2 * CIN, COUT), lambda n, t: (0, 0)),
            ],
            out_specs=pl.BlockSpec(
                (pl.Squeezed(), tile_h // 2, W // 2, COUT),
                lambda n, t: (n, t, 0, 0),
            ),
        ),
        compiler_params=pltpu.CompilerParams(
            dimension_semantics=("parallel", "parallel"),
            vmem_limit_bytes=32 * 1024 * 1024,
        ),
    )(x_pk, scale, shift, w2)

    # TODO(synk): for tiny COUT (<128, as in the demo) the output store is
    # lane-masked; real DenseNet transition widths (>=128) are lane-dense.
    return jnp.transpose(out_nhwc, (0, 3, 1, 2))  # back to NCHW


def _reference(x_nchw, gamma, beta, conv_w, eps=1e-5):
    """Plain-JAX reference mirroring the PyTorch forward (training-mode BN, dropRate=0)."""
    mean = jnp.mean(x_nchw, axis=(0, 2, 3))
    var = jnp.mean((x_nchw - mean[None, :, None, None]) ** 2, axis=(0, 2, 3))
    xn = (x_nchw - mean[None, :, None, None]) / jnp.sqrt(var[None, :, None, None] + eps)
    xn = xn * gamma[None, :, None, None] + beta[None, :, None, None]
    h = jnp.maximum(xn, 0.0)
    y = jnp.einsum("nchw,co->nohw", h, conv_w)  # 1x1 conv, no bias
    N, Co, Hh, Ww = y.shape
    return y.reshape(N, Co, Hh // 2, 2, Ww // 2, 2).mean(axis=(3, 5))


if __name__ == "__main__":
    N, CIN, COUT, H, W = 2, 4, 8, 16, 16

    key = jax.random.PRNGKey(0)
    kx, kw, kg, kb = jax.random.split(key, 4)

    x = jax.random.normal(kx, (N, CIN, H, W), dtype=jnp.float32)
    # PyTorch conv weight is (out, in, 1, 1); we store it as (Cin, Cout).
    conv_w = jax.random.normal(kw, (COUT, CIN, 1, 1), dtype=jnp.float32) * 0.2
    conv_w = jnp.transpose(conv_w[:, :, 0, 0], (1, 0))  # (Cin, Cout)
    gamma = 1.0 + 0.1 * jax.random.normal(kg, (CIN,), dtype=jnp.float32)
    beta = 0.1 * jax.random.normal(kb, (CIN,), dtype=jnp.float32)

    ref = jax.block_until_ready(_reference(x, gamma, beta, conv_w))

    # Multi-tile grid path: grid = (N, H // tile_h) = (2, 2).
    out = jax.block_until_ready(transition_block(x, gamma, beta, conv_w, tile_h=8))
    assert out.shape == (N, COUT, H // 2, W // 2), out.shape
    np.testing.assert_allclose(np.asarray(out), np.asarray(ref), rtol=2e-2, atol=5e-3)

    # Auto-picked tile (single H tile for this small input).
    out2 = jax.block_until_ready(transition_block(x, gamma, beta, conv_w))
    np.testing.assert_allclose(np.asarray(out2), np.asarray(ref), rtol=2e-2, atol=5e-3)

    print("KERNEL_OK")
</pallas_src>

<mosaic_0001>
module attributes {stable_mosaic.version = 11 : i64} {
  func.func @_transition_kernel(%arg0: i32, %arg1: i32, %arg2: memref<1x8x8x8xf32, #tpu.memory_space<vmem>>, %arg3: memref<1x8xf32, #tpu.memory_space<vmem>>, %arg4: memref<1x8xf32, #tpu.memory_space<vmem>>, %arg5: memref<8x8xbf16, #tpu.memory_space<vmem>>, %arg6: memref<1x4x8x8xf32, #tpu.memory_space<vmem>>) attributes {dimension_semantics = [#tpu.dimension_semantics<parallel>, #tpu.dimension_semantics<parallel>], iteration_bounds = array<i64: 2, 2>, scalar_prefetch = 0 : i64, scratch_operands = 0 : i64, tpu.core_type = #tpu.core_type<tc>, window_params = [{transform_indices = @transform_0, window_bounds = array<i64: 1, 8, 8, 8>}, {pipeline_mode = #tpu.pipeline_mode<synchronous>, transform_indices = @transform_1, window_bounds = array<i64: 1, 8>}, {pipeline_mode = #tpu.pipeline_mode<synchronous>, transform_indices = @transform_2, window_bounds = array<i64: 1, 8>}, {pipeline_mode = #tpu.pipeline_mode<synchronous>, transform_indices = @transform_3, window_bounds = array<i64: 8, 8>}, {transform_indices = @transform_4, window_bounds = array<i64: 1, 4, 8, 8>}]} {
    %c0 = arith.constant 0 : index
    %c0_0 = arith.constant 0 : index
    %c0_1 = arith.constant 0 : index
    %c0_2 = arith.constant 0 : index
    %0 = vector.load %arg2[%c0, %c0_0, %c0_1, %c0_2] : memref<1x8x8x8xf32, #tpu.memory_space<vmem>>, vector<1x8x8x8xf32>
    %1 = vector.shape_cast %0 : vector<1x8x8x8xf32> to vector<8x8x8xf32>
    %c0_3 = arith.constant 0 : index
    %c0_4 = arith.constant 0 : index
    %2 = vector.load %arg3[%c0_3, %c0_4] : memref<1x8xf32, #tpu.memory_space<vmem>>, vector<1x8xf32>
    %3 = vector.shape_cast %2 : vector<1x8xf32> to vector<1x1x8xf32>
    %c0_5 = arith.constant 0 : index
    %c0_6 = arith.constant 0 : index
    %4 = vector.load %arg4[%c0_5, %c0_6] : memref<1x8xf32, #tpu.memory_space<vmem>>, vector<1x8xf32>
    %5 = vector.shape_cast %4 : vector<1x8xf32> to vector<1x1x8xf32>
    %6 = vector.broadcast %3 : vector<1x1x8xf32> to vector<8x8x8xf32>
    %7 = arith.mulf %1, %6 : vector<8x8x8xf32>
    %8 = vector.broadcast %5 : vector<1x1x8xf32> to vector<8x8x8xf32>
    %9 = arith.addf %7, %8 : vector<8x8x8xf32>
    %cst = arith.constant 0.000000e+00 : f32
    %10 = vector.broadcast %cst : f32 to vector<8x8x8xf32>
    %11 = arith.maximumf %9, %10 : vector<8x8x8xf32>
    %12 = vector.shape_cast %11 : vector<8x8x8xf32> to vector<4x2x8x8xf32>
    %13 = vector.extract_strided_slice %12 {offsets = [0, 0, 0, 0], sizes = [4, 1, 8, 8], strides = [1, 1, 1, 1]} : vector<4x2x8x8xf32> to vector<4x1x8x8xf32>
    %14 = vector.shape_cast %13 : vector<4x1x8x8xf32> to vector<4x8x8xf32>
    %15 = vector.extract_strided_slice %12 {offsets = [0, 1, 0, 0], sizes = [4, 1, 8, 8], strides = [1, 1, 1, 1]} : vector<4x2x8x8xf32> to vector<4x1x8x8xf32>
    %16 = vector.shape_cast %15 : vector<4x1x8x8xf32> to vector<4x8x8xf32>
    %17 = arith.addf %14, %16 : vector<4x8x8xf32>
    %18 = vector.shape_cast %17 : vector<4x8x8xf32> to vector<32x8xf32>
    %19 = arith.truncf %18 : vector<32x8xf32> to vector<32x8xbf16>
    %c0_7 = arith.constant 0 : index
    %c0_8 = arith.constant 0 : index
    %20 = vector.load %arg5[%c0_7, %c0_8] : memref<8x8xbf16, #tpu.memory_space<vmem>>, vector<8x8xbf16>
    %cst_9 = arith.constant dense<0.000000e+00> : vector<32x8xf32>
    %21 = tpu.matmul %19, %20, %cst_9 {dimension_numbers = #tpu.dot_dimension_numbers<[1], [0], [0], [1], [0, 0, 1, 1], [], []>} : vector<32x8xbf16>, vector<8x8xbf16>, vector<32x8xf32> -> vector<32x8xf32>
    %22 = vector.shape_cast %21 : vector<32x8xf32> to vector<4x8x8xf32>
    %c0_10 = arith.constant 0 : index
    %c0_11 = arith.constant 0 : index
    %c0_12 = arith.constant 0 : index
    %c0_13 = arith.constant 0 : index
    %23 = vector.load %arg6[%c0_10, %c0_11, %c0_12, %c0_13] : memref<1x4x8x8xf32, #tpu.memory_space<vmem>>, vector<1x4x8x8xf32>
    %24 = vector.shape_cast %23 : vector<1x4x8x8xf32> to vector<4x8x8xf32>
    %25 = vector.shape_cast %22 : vector<4x8x8xf32> to vector<1x4x8x8xf32>
    tpu.vector_store %arg6[%c0_10, %c0_11, %c0_12, %c0_13], %25 {strides = array<i32>} : memref<1x4x8x8xf32, #tpu.memory_space<vmem>>, vector<1x4x8x8xf32>,
    return
  }
  func.func @transform_0(%arg0: i32, %arg1: i32) -> (i32, i32, i32, i32) {
    %c0_i32 = arith.constant 0 : i32
    %c0_i32_0 = arith.constant 0 : i32
    %c0_i32_1 = arith.constant 0 : i32
    return %arg0, %arg1, %c0_i32, %c0_i32_0 : i32, i32, i32, i32
  }
  func.func @transform_1(%arg0: i32, %arg1: i32) -> (i32, i32) {
    %c0_i32 = arith.constant 0 : i32
    %c0_i32_0 = arith.constant 0 : i32
    %c0_i32_1 = arith.constant 0 : i32
    return %c0_i32, %c0_i32_0 : i32, i32
  }
  func.func @transform_2(%arg0: i32, %arg1: i32) -> (i32, i32) {
    %c0_i32 = arith.constant 0 : i32
    %c0_i32_0 = arith.constant 0 : i32
    %c0_i32_1 = arith.constant 0 : i32
    return %c0_i32, %c0_i32_0 : i32, i32
  }
  func.func @transform_3(%arg0: i32, %arg1: i32) -> (i32, i32) {
    %c0_i32 = arith.constant 0 : i32
    %c0_i32_0 = arith.constant 0 : i32
    %c0_i32_1 = arith.constant 0 : i32
    return %c0_i32, %c0_i32_0 : i32, i32
  }
  func.func @transform_4(%arg0: i32, %arg1: i32) -> (i32, i32, i32, i32) {
    %c0_i32 = arith.constant 0 : i32
    %c0_i32_0 = arith.constant 0 : i32
    %c0_i32_1 = arith.constant 0 : i32
    return %arg0, %arg1, %c0_i32, %c0_i32_0 : i32, i32, i32, i32
  }
}

</mosaic_0001>

<bundles_post_ra>
// kernel: tpu_custom_call.1
= control target key start
LH: loop header
LB: loop body
LE: loop exit
PB: predicated region body
PF: predicated region fallthrough
CT: control target
= control target key end

     0   :  { %9 = vsyncpa [#allocation3], 0  ;;  %s823_s0 = inlined_call_operand.vmem [shape: f32[2,16,8,8], index: 0, kind: input, shape index: {}]   ;;  %s824_s1 = inlined_call_operand.vmem [shape: f32[1,8], index: 1, kind: input, shape index: {}]   ;;  %s825_s2 = inlined_call_operand.vmem [shape: f32[1,8], index: 2, kind: input, shape index: {}]   ;;  %s826_s3 = inlined_call_operand.vmem [shape: bf16[8,8], index: 3, kind: input, shape index: {}]   ;;  %s827_s4 = inlined_call_operand.hbm [shape: f32[2,8,8,8], index: 4, kind: output, shape index: {}]  }
   0x1   :  { %11 = vsyncpa [#allocation3 + $0x1], 0  ;;  %s669_s15 = smov 0   ;;  %s671_s16 = smov 0  }
   0x2   :  { %s673_s17 = smov 0   ;;  %s675_s18 = smov 0  }
   0x3   :  { %s677_s19 = smov 0   ;;  %s679_s20 = smov 0  }
   0x4   :  { %s681_s21 = smov 0   ;;  %s683_s22 = smov 0  }
   0x5 LB: > { %s443_s23 = sadd.s32 4294967295, %s639_s22   ;;  %s444_s24 = sadd.s32 4294967294, %s639_s22   ;;  %s639_s22 = sphi %s683_s22, %s17_s22   ;;  %s635_s21 = sphi %s681_s21, %s836_s21   ;;  %s631_s20 = sphi %s679_s20, %s835_s20   ;;  %s627_s19 = sphi %s677_s19, %s834_s19   ;;  %s623_s18 = sphi %s675_s18, %s833_s18   ;;  %s619_s17 = sphi %s673_s17, %s832_s17   ;;  %s615_s16 = sphi %s671_s16, %s831_s16   ;;  %s611_s15 = sphi %s669_s15, %s830_s15  }
   0x6   : > { %s26_s25 = sadd.s32 1, %s631_s20  ;;  %s29_s26 = sadd.s32 1, %s635_s21 }
   0x7   : > { %p27_p0 = scmp.ge.s32.totalorder %s26_s25, 2  ;;  %p139_p1 = scmp.ne.s32.totalorder %s619_s17, %s615_s16 }
   0x8   : > { %p140_p2 = scmp.eq.s32.totalorder %s443_s23, 3  ;;  %p145_p5 = scmp.ne.s32.totalorder %s615_s16, %s611_s15 }
   0x9   : > { %s838_s25 = smov (%p27_p0, %s26_s25), 0  ;;  %s840_s26 = smov (!%p27_p0, %s29_s26), %s635_s21 }
   0xa   : > { %s125_s27 = ssub.s32 %s631_s20, %s838_s25  ;;  %p720_p3 = por %p140_p2, %p139_p1 }
   0xb   : > { %p31_p4 = scmp.ge.s32.totalorder %s840_s26, 2  ;;  %p146_p6 = scmp.eq.s32.totalorder %s444_s24, 3 }
   0xc   : > { %p447_p7 = scmp.ge.s32.totalorder %s639_s22, 1  ;;  %p186_p9 = scmp.lt.s32.totalorder %s639_s22, 5 }
   0xd   : > { %s842_s26 = smov (%p31_p4, %s840_s26), 0  ;;  %p729_p8 = por %p146_p6, %p145_p5 }
   0xe   : > { %s124_s30 = ssub.s32 %s635_s21, %s842_s26  ;;  %s129_s5 = sadd.s32 1, %s619_s17 }
   0xf   : > { %s126_s6 = sor.u32 %s125_s27, %s124_s30  ;;  %p187_p10 = pnand %p447_p7, %p186_p9 }
  0x10   : > { %p127_p11 = scmp.eq.s32.totalorder %s126_s6, 0  ;;  %v280_v0 = vld [vmem:[%s826_s3] sm:$0xf] (!%p187_p10)  ;;  %vm288_vm0 = vcmask (!%p187_p10), 1043456   ;;  %s449_s10 = sshll.u32 (!%p187_p10), %s623_s18, 3  ;;  %vm281_vm1 = vcmask (!%p187_p10), 64512  }
  0x11   : > { %190 = sbr.rel (%p187_p10) target bundleno = 274 (0x112), region = 36  ;;  %p217_p12 = scmp.lt.s32.totalorder (!%p187_p10), %s627_s19, 1  ;;  %471 = vmatprep.subr.msk.bf16.mxu0 (!%p187_p10), %vm288_vm0, %v280_v0  ;;  %v290_v1 = vsel (!%p187_p10), %vm288_vm0, %v280_v0, 0  ;;  %v452_v2 = vld [vmem:[%s824_s1] ss:$0 sm:$0xff] (!%p187_p10) }
  0x12   : > { %s738_s7 = scalar_select %p127_p11, %s619_s17, %s129_s5  }
  0x13   : > { %p219_p13 = scmp.lt.s32.totalorder (!%p187_p10), %s449_s10, 15  ;;  %466 = vmatpush3.bf16.msra.mxu0 (!%p187_p10), %v290_v1  ;;  %v453_v3 = vld [vmem:[%s825_s2] ss:$0 sm:$0xff] (!%p187_p10)  ;;  %s213_s9 = sand.u32 (!%p187_p10), 1, %s615_s16  }
  0x14   : > { %s771_s30 = scalar_lea.sflag (!%p187_p10), [#allocation3], %s213_s9  ;;  %s641_s6 = smov (!%p187_p10), [#allocation2]  }
  0x15   : > { %s549_s8 = sshll.u32 (!%p187_p10), %s641_s6, 4  ;;  %s550_s8 = int_to_ptr.vmem [resolvable:$false] %s549_s8 }
  0x18   : > { %s218_s11 = scalar_select %p217_p12, %s627_s19, 1 }
  0x19   : > { %s844_s10 = smov (!%p219_p13, %s449_s10), 15 }
  0x1a   : > { %s450_s12 = sshll.u32 %s218_s11, 4  ;;  %s458_s11 = sshll.u32 %s627_s19, 3 }
  0x1b   : > { %s222_s13 = sadd.s32 %s450_s12, %s844_s10  ;;  %s457_s10 = sshll.u32 %s623_s18, 2 }
  0x1c   : > { %s451_s14 = sshll.u32 %s222_s13, 3  ;;  %s448_s12 = sshll.u32 %s213_s9, 5 }
  0x1d   : > { %s224_s5 = scalar_lea.vmem %s823_s0, %s451_s14  ;;  %s358_s13 = sadd.s32 %s458_s11, %s457_s10 }
  0x1e   : > { %v228_v4 = vld [vmem:[%s224_s5] sm:$0xff]  ;;  %v229_v5 = vld [vmem:[%s224_s5 + $0x8] sm:$0xff]  ;;  %v230_v6 = vld [vmem:[%s224_s5 + $0x10] sm:$0xff]  ;;  %s215_s14 = scalar_lea.vmem [#allocation2], %s448_s12  ;;  %s459_s24 = sshll.u32 %s358_s13, 7 }
  0x1f   : > { %v231_v7 = vld [vmem:[%s224_s5 + $0x18] sm:$0xff]  ;;  %v244_v8 = vmul.f32 %v452_v2, %v228_v4  ;;  %v245_v9 = vmul.f32 %v452_v2, %v229_v5  ;;  %v246_v10 = vmul.f32 %v452_v2, %v230_v6  ;;  %v232_v11 = vld [vmem:[%s224_s5 + $0x20] sm:$0xff]  ;;  %v233_v12 = vld [vmem:[%s224_s5 + $0x28] sm:$0xff]  ;;  %s361_s23 = sshll.u32 %s215_s14, 4  ;;  %s767_s27 = scalar_lea.hbm %s827_s4, %s459_s24  ;;  %s761_s23 = int_to_ptr.vmem [resolvable:$true] %s361_s23 }
  0x20   : > { %v247_v13 = vmul.f32 %v452_v2, %v231_v7  ;;  %v234_v14 = vld [vmem:[%s224_s5 + $0x30] sm:$0xff]  ;;  %v235_v15 = vld [vmem:[%s224_s5 + $0x38] sm:$0xff]  ;;  %v248_v16 = vmul.f32 %v452_v2, %v232_v11  ;;  %v249_v17 = vmul.f32 %v452_v2, %v233_v12  ;;  %s545_s5 = scalar_lea.vmem %s761_s23, 512  ;;  %s551_s10 = scalar_lea.vmem %s550_s8, 1024 }
  0x21   : > { %v258_v18 = vadd.f32 %v453_v3, %v244_v8  ;;  %v259_v19 = vadd.f32 %v453_v3, %v245_v9  ;;  %v260_v20 = vadd.f32 %v453_v3, %v246_v10  ;;  %v250_v21 = vmul.f32 %v452_v2, %v234_v14  ;;  %p546_p0 = scmp.ne.s32.totalorder %s761_s23, %s545_s5  ;;  %p552_p4 = scmp.lt.s32.totalorder %s761_s23, %s550_s8 }
  0x22   : > { %v261_v22 = vadd.f32 %v453_v3, %v247_v13  ;;  %v251_v23 = vmul.f32 %v452_v2, %v235_v15  ;;  %v262_v24 = vadd.f32 %v453_v3, %v248_v16  ;;  %v263_v25 = vadd.f32 %v453_v3, %v249_v17  ;;  %p553_p5 = scmp.lt.s32.totalorder %s551_s10, %s545_s5 }
  0x23   : > { %v266_v26 = vmax.f32 %v258_v18, 0.0  ;;  %v267_v27 = vmax.f32 %v259_v19, 0.0  ;;  %v268_v28 = vmax.f32 %v260_v20, 0.0  ;;  %v264_v29 = vadd.f32 %v453_v3, %v250_v21  ;;  %p547_p1 = pnand %p546_p0, %p720_p3 }
  0x24   : > { %v269_v30 = vmax.f32 %v261_v22, 0.0  ;;  %v265_v31 = vadd.f32 %v453_v3, %v251_v23  ;;  %v270_v32 = vmax.f32 %v262_v24, 0.0  ;;  %v271_v33 = vmax.f32 %v263_v25, 0.0  ;;  %p554_p6 = por %p553_p5, %p552_p4 }
  0x25   : > { %v274_v34 = vadd.f32 %v267_v27, %v266_v26  ;;  %v272_v35 = vmax.f32 %v264_v29, 0.0  ;;  %p548_p2 = pneg %p547_p1 }
  0x26   : > { %v275_v36 = vadd.f32 %v269_v30, %v268_v28  ;;  %v273_v37 = vmax.f32 %v265_v31, 0.0  ;;  %v276_v38 = vadd.f32 %v271_v33, %v270_v32 }
  0x27   : > { %p555_p7 = pnand %p554_p6, %p548_p2 }
  0x28   : > { %v278_v39 = vpack.c.bf16 %v275_v36, %v274_v34  ;;  %v277_v40 = vadd.f32 %v273_v37, %v272_v35 }
  0x2a   : > { %467 = vmatprep.mubr.msk.bf16.mxu0 %vm281_vm1, %v278_v39  ;;  %v279_v41 = vpack.c.bf16 %v277_v40, %v276_v38 }
  0x2c   : > { %468 = vmatmul.mubr.msk.bf16.vlgmr.msra.gmra.mrb[0].mxu0 %vm281_vm1, %v279_v41 }
  0xff   : > { %v469_v42 = vpop.f32.mrb[0].mxu0 }
 0x100   : > { %343 = vst.msk [vmem:[%s215_s14 + $0x10] sm:$0xff] %vm281_vm1, %v469_v42  ;;  %v326_v43 = vpop.f32.mrb[1].mxu0 }
 0x101   : > { %341 = vst.msk [vmem:[%s215_s14] sm:$0xff] %vm281_vm1, %v326_v43  ;;  %v470_v44 = vpop.f32.mrb[2].mxu0 }
 0x102   : > { %344 = vst.msk [vmem:[%s215_s14 + $0x18] sm:$0xff] %vm281_vm1, %v470_v44  ;;  %v329_v45 = vpop.f32.mrb[3].mxu0 }
 0x103   : > { %342 = vst.msk [vmem:[%s215_s14 + $0x8] sm:$0xff] %vm281_vm1, %v329_v45 }
 0x104   : > { %558 = shalt.err (!%p555_p7)
}
 0x105   : > { %s559_s9 = scalar_lea.hbm %s767_s27, 512  ;;  %s563_s13 = scalar_lea.hbm %s827_s4, 2048 }
 0x106   : > { %p560_p9 = scmp.ne.s32.totalorder %s767_s27, %s559_s9  ;;  %p564_p12 = scmp.lt.u32.totalorder %s767_s27, %s827_s4 }
 0x107   : > { %p565_p13 = scmp.lt.u32.totalorder %s563_s13, %s559_s9  ;;  %p567_p1 = scmp.lt.u32.totalorder %s559_s9, %s767_s27 }
 0x108   : > { %p561_p10 = pnand %p560_p9, %p720_p3 }
 0x109   : > { %p566_p0 = por %p565_p13, %p564_p12 }
 0x10a   : > { %p562_p11 = pneg %p561_p10 }
 0x10b   : > { %p568_p2 = por %p567_p1, %p566_p0 }
 0x10d   : > { %p569_p4 = pnand %p568_p2, %p562_p11 }
 0x10f   : > { %572 = shalt.err (!%p569_p4)
}
 0x110   : > { %s642_s18 = smov 128   ;;  %s643_s19 = smov 8  }
 0x111   : > { %472 = dma.vmem_to_hbm [thread:$0]  (%p720_p3), %s761_s23, 512, %s767_s27, %s771_s30, %s642_s18, %s642_s18, %s643_s19  }
 0x112 PF: > { %p478_p5 = scmp.ge.s32.totalorder %s639_s22, 2  ;;  %s376_s5 = sand.u32 1, %s611_s15  }
 0x113   : > { %s377_s6 = scalar_lea.sflag [#allocation3], %s376_s5 }
 0x114   : > { %p475_p6 = pnand %p478_p5, %p729_p8 }
 0x116   : > { %606 = dma.done.wait (!%p475_p6), %s377_s6, 512  }
 0x117   : > { %608 = vsyncadd (!%p475_p6), %s377_s6, 4294966784  ;;  %s17_s22 = sadd.s32 1, %s639_s22   ;;  %s830_s15 = smov %s615_s16 }
 0x118   : > { %p14_p7 = scmp.ge.s32.totalorder %s17_s22, 6   ;;  %s831_s16 = smov %s619_s17 }
 0x119   : > { %s832_s17 = smov %s738_s7  ;;  %s833_s18 = smov %s631_s20 }
 0x11a   : > { %s834_s19 = smov %s635_s21  ;;  %s835_s20 = smov %s838_s25 }
 0x11b   : > { %s836_s21 = smov %s842_s26  ;;  %16 = sbr.rel (!%p14_p7) target bundleno = 5 (0x5), region = 71 }
 0x122   :  { %382 = vsyncpa [#allocation3], 1 }
 0x123   :  { %384 = vsyncpa [#allocation3 + $0x1], 1 }

</bundles_post_ra>
